<compile_context>
chip_gen: v6e
topology: v6e:2x2x1
jax: 0.10.0
libtpu: 0.0.40
codegen_flags: <defaults>
</compile_context>

<pallas_src>
import jax
import jax.numpy as jnp
from jax.experimental import pallas as pl
from jax.experimental.pallas import tpu as pltpu


def _round_up(n, m):
    return ((n + m - 1) // m) * m


def policy_net_kernel(x_ref, w1_ref, b1_ref, w2_ref, b2_ref, o_ref):
    # fc1 + ReLU: (tb, S) @ (S, H) -> (tb, H)
    h = jnp.dot(x_ref[...], w1_ref[...],
                preferred_element_type=jnp.float32,
                precision=jax.lax.Precision.HIGHEST)
    h = jnp.maximum(h + b1_ref[...], 0.0)              # b1: (1, H) broadcast over rows

    # fc2: (tb, H) @ (H, A) -> (tb, A)
    logits = jnp.dot(h, w2_ref[...],
                     preferred_element_type=jnp.float32,
                     precision=jax.lax.Precision.HIGHEST)
    logits = logits + b2_ref[...]                       # b2: (1, A)

    # Numerically stable softmax over the action axis, exact normalization.
    m = jnp.max(logits, axis=-1, keepdims=True)
    e = jnp.exp(logits - m)
    o_ref[...] = (e / jnp.sum(e, axis=-1, keepdims=True)).astype(o_ref.dtype)


def policy_net_forward(x, w1, b1, w2, b2, *, block_b=4096):
    """x: (B, S); w1: (S, H); b1: (1, H) or (H,); w2: (H, A); b2: (1, A) or (A,).

    Returns softmax(relu(x @ w1 + b1) @ w2 + b2, axis=1) of shape (B, A).
    """
    B, S = x.shape
    H = w1.shape[1]
    A = w2.shape[1]

    x = jnp.asarray(x, jnp.float32)
    w1 = jnp.asarray(w1, jnp.float32)
    w2 = jnp.asarray(w2, jnp.float32)
    b1c = jnp.asarray(b1, jnp.float32).reshape(1, H)
    b2c = jnp.asarray(b2, jnp.float32).reshape(1, A)

    # Batch tile (sublane axis of x / out blocks).
    #   * Small batch: one full-extent block (always legal, single grid step).
    #   * Larger batch: >= 2 grid steps (multiple-of-8 tile) so the "parallel"
    #     batch axis can use both TensorCores on v7x, capped at block_b to
    #     bound per-step VMEM.  Pallas handles a ragged last tile itself.
    if B <= 256:
        tb = B
    else:
        tb = min(block_b, _round_up(pl.cdiv(B, 2), 8))
    n_tiles = pl.cdiv(B, tb)

    return pl.pallas_call(
        policy_net_kernel,
        out_shape=jax.ShapeDtypeStruct((B, A), jnp.float32),
        grid_spec=pltpu.PrefetchScalarGridSpec(
            num_scalar_prefetch=0,
            grid=(n_tiles,),
            in_specs=[
                pl.BlockSpec((tb, S), lambda i: (i, 0)),   # x streams over batch tiles
                pl.BlockSpec((S, H), lambda i: (0, 0)),    # weights stay VMEM-resident
                pl.BlockSpec((1, H), lambda i: (0, 0)),
                pl.BlockSpec((H, A), lambda i: (0, 0)),
                pl.BlockSpec((1, A), lambda i: (0, 0)),
            ],
            out_specs=pl.BlockSpec((tb, A), lambda i: (i, 0)),
        ),
        compiler_params=pltpu.CompilerParams(
            dimension_semantics=("parallel",),   # batch axis shardable across v7x TCs
        ),
    )(x, w1, b1c, w2, b2c)


def init_linear_params(key, in_features, out_features):
    """Deterministic init mimicking torch.nn.Linear (uniform +/- 1/sqrt(fan_in)).

    Returns weight in (in_features, out_features) layout (x @ W convention)."""
    kw, kb = jax.random.split(key)
    bound = 1.0 / jnp.sqrt(jnp.float32(in_features))
    w = jax.random.uniform(kw, (in_features, out_features), jnp.float32, -bound, bound)
    b = jax.random.uniform(kb, (1, out_features), jnp.float32, -bound, bound)
    return w, b


def _reference(x, w1, b1, w2, b2):
    h = jnp.maximum(
        jnp.dot(x, w1, precision=jax.lax.Precision.HIGHEST) + b1.reshape(1, -1), 0.0)
    logits = jnp.dot(h, w2, precision=jax.lax.Precision.HIGHEST) + b2.reshape(1, -1)
    return jax.nn.softmax(logits, axis=1)


if __name__ == "__main__":
    # Small shapes consistent with the module: state_dim=4, hidden_dim=32, action_dim=2
    batch, state_dim, hidden_dim, action_dim = 8, 4, 32, 2

    key = jax.random.PRNGKey(0)
    kx, k1, k2, kx2 = jax.random.split(key, 4)

    x = jax.random.normal(kx, (batch, state_dim), jnp.float32)
    w1, b1 = init_linear_params(k1, state_dim, hidden_dim)
    w2, b2 = init_linear_params(k2, hidden_dim, action_dim)

    # Small single-tile case.
    out = jax.block_until_ready(policy_net_forward(x, w1, b1, w2, b2))
    ref = _reference(x, w1, b1, w2, b2)
    assert out.shape == (batch, action_dim)
    assert jnp.allclose(out, ref, atol=1e-4, rtol=1e-4), float(jnp.max(jnp.abs(out - ref)))
    assert jnp.allclose(jnp.sum(out, axis=1), 1.0, atol=1e-5)

    # Larger, ragged, multi-tile case exercising the batch grid (1000 -> 2 tiles of 504)
    # and verifying that the padded rows of the last tile do not leak.
    big_batch = 1000
    x_big = jax.random.normal(kx2, (big_batch, state_dim), jnp.float32)
    out_big = jax.block_until_ready(policy_net_forward(x_big, w1, b1, w2, b2))
    ref_big = _reference(x_big, w1, b1, w2, b2)
    assert out_big.shape == (big_batch, action_dim)
    assert jnp.allclose(out_big, ref_big, atol=1e-4, rtol=1e-4), \
        float(jnp.max(jnp.abs(out_big - ref_big)))
    assert jnp.allclose(jnp.sum(out_big, axis=1), 1.0, atol=1e-5)

    print("KERNEL_OK")
</pallas_src>

<mosaic_0001>
module attributes {stable_mosaic.version = 11 : i64} {
  func.func @policy_net_kernel(%arg0: i32, %arg1: memref<8x4xf32, #tpu.memory_space<vmem>>, %arg2: memref<4x32xf32, #tpu.memory_space<vmem>>, %arg3: memref<1x32xf32, #tpu.memory_space<vmem>>, %arg4: memref<32x2xf32, #tpu.memory_space<vmem>>, %arg5: memref<1x2xf32, #tpu.memory_space<vmem>>, %arg6: memref<8x2xf32, #tpu.memory_space<vmem>>) attributes {dimension_semantics = [#tpu.dimension_semantics<parallel>], iteration_bounds = array<i64: 1>, scalar_prefetch = 0 : i64, scratch_operands = 0 : i64, tpu.core_type = #tpu.core_type<tc>, window_params = [{transform_indices = @transform_0, window_bounds = array<i64: 8, 4>}, {pipeline_mode = #tpu.pipeline_mode<synchronous>, transform_indices = @transform_1, window_bounds = array<i64: 4, 32>}, {pipeline_mode = #tpu.pipeline_mode<synchronous>, transform_indices = @transform_2, window_bounds = array<i64: 1, 32>}, {pipeline_mode = #tpu.pipeline_mode<synchronous>, transform_indices = @transform_3, window_bounds = array<i64: 32, 2>}, {pipeline_mode = #tpu.pipeline_mode<synchronous>, transform_indices = @transform_4, window_bounds = array<i64: 1, 2>}, {transform_indices = @transform_5, window_bounds = array<i64: 8, 2>}]} {
    %c0 = arith.constant 0 : index
    %c0_0 = arith.constant 0 : index
    %0 = vector.load %arg1[%c0, %c0_0] : memref<8x4xf32, #tpu.memory_space<vmem>>, vector<8x4xf32>
    %c0_1 = arith.constant 0 : index
    %c0_2 = arith.constant 0 : index
    %1 = vector.load %arg2[%c0_1, %c0_2] : memref<4x32xf32, #tpu.memory_space<vmem>>, vector<4x32xf32>
    %cst = arith.constant dense<0.000000e+00> : vector<8x32xf32>
    %2 = tpu.matmul %0, %1, %cst {dimension_numbers = #tpu.dot_dimension_numbers<[1], [0], [0], [1], [0, 0, 1, 1], [], []>, precision = #tpu.contract_precision<fp32>} : vector<8x4xf32>, vector<4x32xf32>, vector<8x32xf32> -> vector<8x32xf32>
    %c0_3 = arith.constant 0 : index
    %c0_4 = arith.constant 0 : index
    %3 = vector.load %arg3[%c0_3, %c0_4] : memref<1x32xf32, #tpu.memory_space<vmem>>, vector<1x32xf32>
    %4 = vector.broadcast %3 : vector<1x32xf32> to vector<8x32xf32>
    %5 = arith.addf %2, %4 : vector<8x32xf32>
    %cst_5 = arith.constant 0.000000e+00 : f32
    %6 = vector.broadcast %cst_5 : f32 to vector<8x32xf32>
    %7 = arith.maximumf %5, %6 : vector<8x32xf32>
    %c0_6 = arith.constant 0 : index
    %c0_7 = arith.constant 0 : index
    %8 = vector.load %arg4[%c0_6, %c0_7] : memref<32x2xf32, #tpu.memory_space<vmem>>, vector<32x2xf32>
    %cst_8 = arith.constant dense<0.000000e+00> : vector<8x2xf32>
    %9 = tpu.matmul %7, %8, %cst_8 {dimension_numbers = #tpu.dot_dimension_numbers<[1], [0], [0], [1], [0, 0, 1, 1], [], []>, precision = #tpu.contract_precision<fp32>} : vector<8x32xf32>, vector<32x2xf32>, vector<8x2xf32> -> vector<8x2xf32>
    %c0_9 = arith.constant 0 : index
    %c0_10 = arith.constant 0 : index
    %10 = vector.load %arg5[%c0_9, %c0_10] : memref<1x2xf32, #tpu.memory_space<vmem>>, vector<1x2xf32>
    %11 = vector.broadcast %10 : vector<1x2xf32> to vector<8x2xf32>
    %12 = arith.addf %9, %11 : vector<8x2xf32>
    %cst_11 = arith.constant dense<0xFF800000> : vector<8xf32>
    %13 = vector.multi_reduction <maximumf>, %12, %cst_11 [1] : vector<8x2xf32> to vector<8xf32>
    %14 = vector.shape_cast %13 : vector<8xf32> to vector<8x1xf32>
    %15 = vector.broadcast %14 : vector<8x1xf32> to vector<8x2xf32>
    %16 = arith.subf %12, %15 : vector<8x2xf32>
    %17 = math.exp %16 : vector<8x2xf32>
    %cst_12 = arith.constant dense<0.000000e+00> : vector<8xf32>
    %18 = vector.multi_reduction <add>, %17, %cst_12 [1] : vector<8x2xf32> to vector<8xf32>
    %19 = vector.shape_cast %18 : vector<8xf32> to vector<8x1xf32>
    %20 = vector.broadcast %19 : vector<8x1xf32> to vector<8x2xf32>
    %21 = arith.divf %17, %20 : vector<8x2xf32>
    %c0_13 = arith.constant 0 : index
    %c0_14 = arith.constant 0 : index
    %22 = vector.load %arg6[%c0_13, %c0_14] : memref<8x2xf32, #tpu.memory_space<vmem>>, vector<8x2xf32>
    tpu.vector_store %arg6[%c0_13, %c0_14], %21 {strides = array<i32>} : memref<8x2xf32, #tpu.memory_space<vmem>>, vector<8x2xf32>,
    return
  }
  func.func @transform_0(%arg0: i32) -> (i32, i32) {
    %c0_i32 = arith.constant 0 : i32
    %c0_i32_0 = arith.constant 0 : i32
    return %arg0, %c0_i32 : i32, i32
  }
  func.func @transform_1(%arg0: i32) -> (i32, i32) {
    %c0_i32 = arith.constant 0 : i32
    %c0_i32_0 = arith.constant 0 : i32
    %c0_i32_1 = arith.constant 0 : i32
    return %c0_i32, %c0_i32_0 : i32, i32
  }
  func.func @transform_2(%arg0: i32) -> (i32, i32) {
    %c0_i32 = arith.constant 0 : i32
    %c0_i32_0 = arith.constant 0 : i32
    %c0_i32_1 = arith.constant 0 : i32
    return %c0_i32, %c0_i32_0 : i32, i32
  }
  func.func @transform_3(%arg0: i32) -> (i32, i32) {
    %c0_i32 = arith.constant 0 : i32
    %c0_i32_0 = arith.constant 0 : i32
    %c0_i32_1 = arith.constant 0 : i32
    return %c0_i32, %c0_i32_0 : i32, i32
  }
  func.func @transform_4(%arg0: i32) -> (i32, i32) {
    %c0_i32 = arith.constant 0 : i32
    %c0_i32_0 = arith.constant 0 : i32
    %c0_i32_1 = arith.constant 0 : i32
    return %c0_i32, %c0_i32_0 : i32, i32
  }
  func.func @transform_5(%arg0: i32) -> (i32, i32) {
    %c0_i32 = arith.constant 0 : i32
    %c0_i32_0 = arith.constant 0 : i32
    return %arg0, %c0_i32 : i32, i32
  }
}

</mosaic_0001>

<bundles_post_ra>
// kernel: tpu_custom_call.1
= control target key start
LH: loop header
LB: loop body
LE: loop exit
PB: predicated region body
PF: predicated region fallthrough
CT: control target
= control target key end

     0   :  { %vm33_vm0 = vcmask 1043456   ;;  %vm29_vm1 = vcmask 31744   ;;  %v1147_v0 = vmov 0.0   ;;  %vm1148_vm2 = vmmov 0   ;;  %s1323_s1 = inlined_call_operand.vmem [shape: f32[4,32], index: 1, kind: input, shape index: {}]   ;;  %s1324_s0 = inlined_call_operand.vmem [shape: f32[8,4], index: 0, kind: input, shape index: {}]   ;;  %s1325_s3 = inlined_call_operand.vmem [shape: f32[32,2], index: 3, kind: input, shape index: {}]   ;;  %s1326_s2 = inlined_call_operand.vmem [shape: f32[1,32], index: 2, kind: input, shape index: {}]   ;;  %s1327_s4 = inlined_call_operand.vmem [shape: f32[1,2], index: 4, kind: input, shape index: {}]   ;;  %s1328_s5 = inlined_call_operand.vmem [shape: f32[8,2], index: 5, kind: output, shape index: {}]  }
   0x1   :  { %1045 = vmatprep.subr.mxu0 %v1147_v0  ;;  %v21_v1 = vld [vmem:[%s1323_s1] sm:$0xf]  ;;  %1047 = vmatprep.mubr.msk.f32.mxu0 %vm1148_vm2, %v1147_v0  ;;  %v487_v15 = vld [vmem:[%s1325_s3 + $0x18] sm:$0xff]  ;;  %v486_v17 = vld [vmem:[%s1325_s3 + $0x10] sm:$0xff]  ;;  %vm495_vm3 = vcmask 261120   ;;  %vm984_vm4 = vcmask 15360  }
   0x2   :  { %v20_v2 = vld [vmem:[%s1324_s0] sm:$0xff]  ;;  %v35_v3 = vsel %vm33_vm0, %v21_v1, 0  ;;  %1050 = vmatprep.subr.mxu1 %v1147_v0  ;;  %1052 = vmatprep.mubr.msk.f32.mxu1 %vm1148_vm2, %v1147_v0  ;;  %v1212_v16 = vand.u32 4294901760, %v487_v15  ;;  %v1220_v19 = vand.u32 4294901760, %v486_v17  ;;  %v485_v20 = vld [vmem:[%s1325_s3 + $0x8] sm:$0xff] }
   0x3   :  { %v31_v4 = vsel %vm29_vm1, %v20_v2, 0  ;;  %v68_v5 = vand.u32 4294901760, %v35_v3  ;;  %v1231_v23 = vand.u32 4294901760, %v485_v20  ;;  %v484_v24 = vld [vmem:[%s1325_s3] sm:$0xff] }
   0x4   :  { %v103_v6 = vand.u32 4294901760, %v31_v4  ;;  %v1218_v18 = vsub.f32 %v487_v15, %v1212_v16  ;;  %v1229_v22 = vsub.f32 %v486_v17, %v1220_v19  ;;  %v1245_v28 = vand.u32 4294901760, %v484_v24  ;;  %v1001_v39 = vld [vmem:[%s1326_s2] ss:$0 sm:$0xff] }
   0x5   :  { %1046 = vmatpush3.msra.mxu0 %v68_v5  ;;  %v145_v8 = vsub.f32 %v35_v3, %v68_v5  ;;  %v1243_v27 = vsub.f32 %v485_v20, %v1231_v23 }
   0x6   :  { %v104_v7 = vsub.f32 %v31_v4, %v103_v6  ;;  %1055 = vmatprep.subr.mxu0 %v1147_v0  ;;  %v605_v21 = vand.u32 4294901760, %v1218_v18  ;;  %v612_v26 = vand.u32 4294901760, %v1229_v22  ;;  %v1254_v32 = vsub.f32 %v484_v24, %v1245_v28 }
   0x7   :  { %v146_v10 = vand.u32 4294901760, %v145_v8  ;;  %v619_v31 = vand.u32 4294901760, %v1243_v27 }
   0x8   :  { %v105_v9 = vand.u32 4294901760, %v104_v7  ;;  %v606_v25 = vsub.f32 %v1218_v18, %v605_v21  ;;  %v613_v30 = vsub.f32 %v1229_v22, %v612_v26  ;;  %v626_v35 = vand.u32 4294901760, %v1254_v32 }
   0x9   :  { %v147_v12 = vsub.f32 %v145_v8, %v146_v10  ;;  %v620_v34 = vsub.f32 %v1243_v27, %v619_v31 }
   0xa   :  { %v106_v11 = vsub.f32 %v104_v7, %v105_v9  ;;  %v607_v29 = vand.u32 4294901760, %v606_v25  ;;  %v614_v33 = vand.u32 4294901760, %v613_v30  ;;  %v627_v37 = vsub.f32 %v1254_v32, %v626_v35 }
   0xb   :  { %v148_v14 = vand.u32 4294901760, %v147_v12  ;;  %v621_v36 = vand.u32 4294901760, %v620_v34 }
   0xc   :  { %v107_v13 = vand.u32 4294901760, %v106_v11  ;;  %v628_v38 = vand.u32 4294901760, %v627_v37 }
   0xd   :  { %1051 = vmatpush3.msra.mxu1 %v148_v14 }
   0xe   :  { %1048 = vmatmul.mubr.f32.vlgmr.msra.gmra.mxu0 %v107_v13  ;;  %1053 = vmatmul.mubr.f32.vlgmr.msra.gmra.mxu1 %v103_v6 }
   0xf   :  { %1056 = vmatpush3.msra.mxu0 %v145_v8  ;;  %1060 = vmatprep.subr.mxu1 %v1147_v0  ;;  %v1002_v8 = vld [vmem:[%s1327_s4] ss:$0 sm:$0xff] }
  0x10   :  { %1057 = vmatprep.mubr.msk.f32.mxu0 %vm1148_vm2, %v1147_v0  ;;  %1061 = vmatpush3.msra.mxu1 %v68_v5 }
  0x11   :  { %1065 = vmatprep.subr.mxu0 %v1147_v0  ;;  %1062 = vmatprep.mubr.msk.f32.mxu1 %vm1148_vm2, %v1147_v0 }
  0x12   :  { %1058 = vmatmul.mubr.f32.vlgmr.msra.gmra.mxu0 %v104_v7  ;;  %1063 = vmatmul.mubr.f32.vlgmr.msra.gmra.mxu1 %v105_v9 }
  0x13   :  { %1066 = vmatpush3.msra.mxu0 %v146_v10  ;;  %1070 = vmatprep.subr.mxu1 %v1147_v0 }
  0x14   :  { %1067 = vmatprep.mubr.msk.f32.mxu0 %vm1148_vm2, %v1147_v0  ;;  %1071 = vmatpush3.msra.mxu1 %v68_v5 }
  0x15   :  { %1072 = vmatprep.mubr.msk.f32.mxu1 %vm1148_vm2, %v1147_v0  ;;  %1086 = vmatprep.subr.mxu1 %v1147_v0 }
  0x16   :  { %1068 = vmatmul.mubr.f32.vlgmr.msra.gmra.mxu0 %v103_v6  ;;  %1073 = vmatmul.mubr.f32.vlgmr.msra.gmra.mxu1 %v103_v6 }
  0x17   :  { %1075 = vmatprep.subr.mxu0 %v1147_v0  ;;  %1094 = vmatprep.mubr.msk.f32.mxu1 %vm1148_vm2, %v1147_v0 }
  0x18   :  { %1083 = vmatprep.mubr.msk.f32.mxu0 %vm1148_vm2, %v1147_v0  ;;  %1076 = vmatpush3.msra.mxu0 %v1212_v16 }
  0x19   :  { %1077 = vmatprep.subr.mxu0 %v1147_v0  ;;  %1087 = vmatpush3.msra.mxu1 %v607_v29 }
  0x1a   :  { %1078 = vmatpush3.msra.mxu0 %v1220_v19  ;;  %1088 = vmatprep.subr.mxu1 %v1147_v0 }
  0x1b   :  { %1079 = vmatprep.subr.mxu0 %v1147_v0  ;;  %1089 = vmatpush3.msra.mxu1 %v614_v33 }
  0x1c   :  { %1080 = vmatpush3.msra.mxu0 %v1231_v23  ;;  %1090 = vmatprep.subr.mxu1 %v1147_v0 }
  0x1d   :  { %1081 = vmatprep.subr.mxu0 %v1147_v0  ;;  %1091 = vmatpush3.msra.mxu1 %v621_v36 }
  0x1e   :  { %1082 = vmatpush3.msra.mxu0 %v1245_v28  ;;  %1092 = vmatprep.subr.mxu1 %v1147_v0 }
  0x1f   :  { %1097 = vmatprep.subr.mxu0 %v1147_v0  ;;  %1093 = vmatpush3.msra.mxu1 %v628_v38 }
  0x20   :  { %1108 = vmatprep.subr.mxu1 %v1147_v0 }
  0xce   :  { %v109_v40 = vpop.f32.mrf.mxu0  ;;  %v185_v42 = vpop.f32.mrf.mxu1 }
  0xcf   :  { %v110_v41 = vadd.f32 %v1001_v39, %v109_v40 }
  0xd0   :  { %v1049_v43 = vpop.f32.mrf.mxu0  ;;  %v1054_v45 = vpop.f32.mrf.mxu1 }
  0xd1   :  { %v186_v44 = vadd.f32 %v185_v42, %v110_v41 }
  0xd2   :  { %v259_v46 = vpop.f32.mrf.mxu0  ;;  %v333_v48 = vpop.f32.mrf.mxu1 }
  0xd3   :  { %v260_v47 = vadd.f32 %v259_v46, %v186_v44 }
  0xd4   :  { %v1059_v49 = vpop.f32.mrf.mxu0  ;;  %v1064_v51 = vpop.f32.mrf.mxu1 }
  0xd5   :  { %v334_v50 = vadd.f32 %v333_v48, %v260_v47 }
  0xd6   :  { %v407_v52 = vpop.f32.mrf.mxu0  ;;  %v479_v54 = vpop.f32.mrf.mxu1 }
  0xd7   :  { %v408_v53 = vadd.f32 %v407_v52, %v334_v50 }
  0xd8   :  { %v1069_v55 = vpop.f32.mrf.mxu0  ;;  %v1074_v57 = vpop.f32.mrf.mxu1 }
  0xd9   :  { %v480_v56 = vadd.f32 %v479_v54, %v408_v53 }
  0xdb   :  { %v483_v58 = vmax.f32 %v480_v56, 0.0 }
  0xdd   :  { %v497_v59 = vsel %vm495_vm3, %v483_v58, 0 }
  0xde   :  { %v568_v60 = vand.u32 4294901760, %v497_v59 }
  0xe0   :  { %v569_v61 = vsub.f32 %v497_v59, %v568_v60  ;;  %1095 = vmatmul.mubr.f32.vlgmr.msra.gmra.mxu1 %v568_v60 }
  0xe1   :  { %1109 = vmatpush3.msra.mxu1 %v1212_v16  ;;  %1116 = vmatprep.mubr.msk.f32.mxu1 %vm1148_vm2, %v1147_v0 }
  0xe2   :  { %1110 = vmatprep.subr.mxu1 %v1147_v0  ;;  %v570_v62 = vand.u32 4294901760, %v569_v61 }
  0xe3   :  { %1111 = vmatpush3.msra.mxu1 %v1220_v19 }
  0xe4   :  { %1112 = vmatprep.subr.mxu1 %v1147_v0  ;;  %v571_v63 = vsub.f32 %v569_v61, %v570_v62 }
  0xe5   :  { %1113 = vmatpush3.msra.mxu1 %v1231_v23 }
  0xe6   :  { %1114 = vmatprep.subr.mxu1 %v1147_v0  ;;  %v572_v1 = vand.u32 4294901760, %v571_v63 }
  0xe7   :  { %1115 = vmatpush3.msra.mxu1 %v1245_v28 }
  0xe8   :  { %1117 = vmatmul.mubr.f32.vlgmr.msra.gmra.mxu1 %v570_v62  ;;  %1130 = vmatprep.subr.mxu1 %v1147_v0 }
  0xe9   :  { %1084 = vmatmul.mubr.f32.vlgmr.msra.gmra.mxu0 %v572_v1  ;;  %1131 = vmatpush3.msra.mxu1 %v1212_v16 }
  0xea   :  { %1098 = vmatpush3.msra.mxu0 %v1218_v18  ;;  %1132 = vmatprep.subr.mxu1 %v1147_v0 }
  0xeb   :  { %1099 = vmatprep.subr.mxu0 %v1147_v0  ;;  %1133 = vmatpush3.msra.mxu1 %v1220_v19 }
  0xec   :  { %1100 = vmatpush3.msra.mxu0 %v1229_v22  ;;  %1134 = vmatprep.subr.mxu1 %v1147_v0 }
  0xed   :  { %1101 = vmatprep.subr.mxu0 %v1147_v0  ;;  %1135 = vmatpush3.msra.mxu1 %v1231_v23 }
  0xee   :  { %1102 = vmatpush3.msra.mxu0 %v1243_v27  ;;  %1136 = vmatprep.subr.mxu1 %v1147_v0 }
  0xef   :  { %1103 = vmatprep.subr.mxu0 %v1147_v0  ;;  %1105 = vmatprep.mubr.msk.f32.mxu0 %vm1148_vm2, %v1147_v0 }
  0xf0   :  { %1104 = vmatpush3.msra.mxu0 %v1254_v32  ;;  %1137 = vmatpush3.msra.mxu1 %v1245_v28 }
  0xf1   :  { %1138 = vmatprep.mubr.msk.f32.mxu1 %vm1148_vm2, %v1147_v0  ;;  %1106 = vmatmul.mubr.f32.vlgmr.msra.gmra.mxu0 %v569_v61 }
  0xf2   :  { %1119 = vmatprep.subr.mxu0 %v1147_v0  ;;  %1139 = vmatmul.mubr.f32.vlgmr.msra.gmra.mxu1 %v568_v60 }
  0xf3   :  { %1120 = vmatpush3.msra.mxu0 %v605_v21  ;;  %1127 = vmatprep.mubr.msk.f32.mxu0 %vm1148_vm2, %v1147_v0 }
  0xf4   :  { %1121 = vmatprep.subr.mxu0 %v1147_v0 }
  0xf5   :  { %1122 = vmatpush3.msra.mxu0 %v612_v26 }
  0xf6   :  { %1123 = vmatprep.subr.mxu0 %v1147_v0 }
  0xf7   :  { %1124 = vmatpush3.msra.mxu0 %v619_v31 }
  0xf8   :  { %1125 = vmatprep.subr.mxu0 %v1147_v0 }
  0xf9   :  { %1126 = vmatpush3.msra.mxu0 %v626_v35 }
  0xfa   :  { %1128 = vmatmul.mubr.f32.vlgmr.msra.gmra.mxu0 %v568_v60 }
 0x1a0   :  { %v665_v2 = vpop.f32.mrf.mxu1 }
 0x1a2   :  { %v1096_v3 = vpop.f32.mrf.mxu1 }
 0x1a8   :  { %v822_v4 = vpop.f32.mrf.mxu1 }
 0x1a9   :  { %v574_v5 = vpop.f32.mrf.mxu0 }
 0x1aa   :  { %v1118_v6 = vpop.f32.mrf.mxu1  ;;  %v575_v9 = vadd.f32 %v1002_v8, %v574_v5 }
 0x1ab   :  { %v1085_v7 = vpop.f32.mrf.mxu0 }
 0x1ac   :  { %v666_v12 = vadd.f32 %v665_v2, %v575_v9 }
 0x1b1   :  { %v745_v10 = vpop.f32.mrf.mxu0 }
 0x1b2   :  { %v980_v11 = vpop.f32.mrf.mxu1  ;;  %v746_v14 = vadd.f32 %v745_v10, %v666_v12 }
 0x1b3   :  { %v1107_v13 = vpop.f32.mrf.mxu0 }
 0x1b4   :  { %v1140_v0 = vpop.f32.mrf.mxu1  ;;  %v823_v15 = vadd.f32 %v822_v4, %v746_v14 }
 0x1ba   :  { %v905_v16 = vpop.f32.mrf.mxu0 }
 0x1bb   :  { %v906_v17 = vadd.f32 %v905_v16, %v823_v15 }
 0x1bc   :  { %v1129_v18 = vpop.f32.mrf.mxu0 }
 0x1bd   :  { %v981_v19 = vadd.f32 %v980_v11, %v906_v17 }
 0x1bf   :  { %v985_v20 = vsel %vm984_vm4, %v981_v19, -inf }
 0x1c0   :  { %986 = vmax.xlane.f32.xlu0 %v985_v20 }
 0x249   :  { %v987_v21 = vpop.xlane.xlu0 %986 }
 0x24a   :  { %v988_v22 = vsub.f32 %v981_v19, %v987_v21 }
 0x24c   :  { %v989_v23 = vmul.f32 1.442695, %v988_v22 }
 0x24e   :  { %1143 = vpow2.f32 %v989_v23 }
 0x25b   :  { %v1144_v24 = vpop.eup %1143 }
 0x25c   :  { %v991_v25 = vsel %vm984_vm4, %v1144_v24, 0.0 }
 0x25d   :  { %992 = vadd.xlane.f32.xlu0 %v991_v25 }
 0x2e6   :  { %v993_v26 = vpop.xlane.xlu0 %992 }
 0x2e7   :  { %1145 = vrcp.f32 %v993_v26 }
 0x2f4   :  { %v1146_v27 = vpop.eup %1145 }
 0x2f5   :  { %v995_v28 = vmul.f32 %v1146_v27, %v1144_v24 }
 0x2f7   :  { %996 = vst.msk [vmem:[%s1328_s5] sm:$0xff] %vm984_vm4, %v995_v28 }

</bundles_post_ra>
